<compile_context>
chip_gen: v7x
topology: tpu7x:2x2x1
jax: 0.10.0
libtpu: 0.0.40
codegen_flags: <defaults>
</compile_context>

<pallas_src>
import math
import numpy as np
import jax
import jax.numpy as jnp
from jax import lax
from jax.experimental import pallas as pl
from jax.experimental.pallas import tpu as pltpu

# ---- synthetic hyper-parameters (the `kwargs` of cnn_1s) ----
CFG = dict(
    B=2, C_IN=4, SEQLEN=32,
    C1=8, K1=3,
    C2=16, K2=4,
    C3=16, K3=3,
    P1=2, P2=2,            # maxpool kernel_size == stride
    F1=32, F2=10,
    BN_EPS=1e-5,
)

# derived per-sample lengths (match the module's fc1_in_channels formula)
L1 = CFG['SEQLEN'] - CFG['K1'] + 1          # conv1 out length  (30)
M1 = L1 // CFG['P1']                        # pool1 out length  (15)
L2 = M1 - CFG['K2'] + 1                     # conv2 out length  (12)
M2 = L2 // CFG['P2']                        # pool2 out length  (6)
L3 = M2 - CFG['K3'] + 1                     # conv3 out length  (4)
FC1_IN = L3 * CFG['C3']                     # 64
F2P = ((CFG['F2'] + 7) // 8) * 8            # fc output rows padded to a sublane multiple (16)

S1 = CFG['P1']                              # lane stride of pool1 / conv2 outputs
S2 = CFG['P1'] * CFG['P2']                  # lane stride of pool2 / conv3 outputs

CMAX = max(CFG['C_IN'], CFG['C1'], CFG['C2'], CFG['C3'])   # padded contraction width (16)

# row offsets inside the single parameter slab (all multiples of 8 -> aligned slices)
R0 = 0
R1 = R0 + CFG['K1'] * CFG['C1']             # 24   conv1 taps
R2 = R1 + CFG['K2'] * CFG['C2']             # 88   conv2 taps
R3 = R2 + CFG['K3'] * CFG['C3']             # 136  conv3 taps
R4 = R3 + L3 * F2P                          # 200  fused-fc taps
RB1 = R4                                    # 200  bn1 shift
RB2 = RB1 + CFG['C1']                       # 208  bn2 shift
RB3 = RB2 + CFG['C2']                       # 224  fused-fc bias
RTOT = RB3 + F2P                            # 240


def _check_strided_layout(cfg):
    """The kernel keeps sample b's data at lanes [b*SEQ, (b+1)*SEQ) through every layer
    and only trims the tail of the lane axis.  Assert that every stage's valid outputs
    still fit and per-sample lengths are positive, so a future B/SEQ/K/P change fails
    loudly instead of silently reading cross-sample garbage."""
    B, SEQ = cfg['B'], cfg['SEQLEN']
    assert min(L1, M1, L2, M2, L3) > 0, "per-sample lengths must be positive"
    stages = [  # (per-sample output length, lane stride, lane trim added by this stage)
        (L1, 1,  cfg['K1'] - 1),
        (M1, S1, cfg['P1'] - 1),
        (L2, S1, (cfg['K2'] - 1) * S1),
        (M2, S2, (cfg['P2'] - 1) * S1),
        (L3, S2, (cfg['K3'] - 1) * S2),
        (1,  1,  (L3 - 1) * S2),
    ]
    width = B * SEQ
    for length, stride, trim in stages:
        width -= trim
        assert (B - 1) * SEQ + (length - 1) * stride < width, \
            "batch-strided lane layout does not hold for these B/SEQLEN/K/P sizes"


def make_kernel(cfg):
    B, SEQ = cfg['B'], cfg['SEQLEN']
    C_IN = cfg['C_IN']
    C1, K1 = cfg['C1'], cfg['K1']
    C2, K2 = cfg['C2'], cfg['K2']
    C3, K3 = cfg['C3'], cfg['K3']
    P1, P2 = cfg['P1'], cfg['P2']

    def taps_sum(big, c_out, K, shift, w_out):
        # big: (K*c_out, W) f32 ;  out[c, j] = sum_k big[k*c_out + c, j + k*shift]
        acc = big[0:c_out, 0:w_out]
        for k in range(1, K):                       # K-1 lane-shifted adds (VPU)
            off = k * shift
            acc = acc + big[k * c_out:(k + 1) * c_out, off:off + w_out]
        return acc

    def pool_max(z, P, shift, w_out):
        # out[c, j] = max_p z[c, j + p*shift]   (pure VPU; no MXU, no compaction)
        m = z[:, 0:w_out]
        for p in range(1, P):
            off = p * shift
            m = jnp.maximum(m, z[:, off:off + w_out])
        return m

    def kernel(x_ref, p_ref, out_ref):
        f32, bf16 = jnp.float32, jnp.bfloat16

        def w(r0, r1, cin):                         # static slab view -> bf16 MXU operand
            return p_ref[r0:r1, 0:cin].astype(bf16)

        def bias(r0, r1):                           # (rows, 1) f32 per-channel bias
            return p_ref[r0:r1, 0:1]

        # lane widths as each stage trims the tail of the batch-strided axis
        Wx  = B * SEQ
        W1  = Wx  - (K1 - 1)
        Wp1 = W1  - (P1 - 1)
        W2  = Wp1 - (K2 - 1) * S1
        Wp2 = W2  - (P2 - 1) * S1
        W3  = Wp2 - (K3 - 1) * S2
        Wfc = W3  - (L3 - 1) * S2

        # conv1 (+ folded bn1): one MXU matmul, taps combined with shifted adds.
        # bn shift is per-channel, so adding it before the max-pool is exact.
        y1 = taps_sum(jnp.dot(w(R0, R1, C_IN), x_ref[...], preferred_element_type=f32),
                      C1, K1, 1, W1) + bias(RB1, RB2)
        # maxpool1 (VPU) + relu1 ; dropout1 = identity (eval)
        a1 = jnp.maximum(pool_max(y1, P1, 1, Wp1), 0.0)

        # conv2 (+ folded bn2): taps offset by k*P1 over the uncompacted pool1 layout
        y2 = taps_sum(jnp.dot(w(R1, R2, C1), a1.astype(bf16), preferred_element_type=f32),
                      C2, K2, S1, W2) + bias(RB2, RB3)
        # maxpool2 (VPU) + relu2 ; dropout2 = identity
        a2 = jnp.maximum(pool_max(y2, P2, S1, Wp2), 0.0)

        # conv3 + relu3: taps offset by k*P1*P2 ; dropout3 = identity
        y3 = jnp.maximum(
            taps_sum(jnp.dot(w(R2, R3, C2), a2.astype(bf16), preferred_element_type=f32),
                     C3, K3, S2, W3), 0.0)

        # fused fc2(fc1(.)) as one matmul + L3-1 shifted adds
        # (exact fusion ONLY because there is no nonlinearity between fc1 and fc2)
        out = taps_sum(jnp.dot(w(R3, R4, C3), y3.astype(bf16), preferred_element_type=f32),
                       F2P, L3, S2, Wfc) + bias(RB3, RTOT)

        # compact output: sample b's logits live at lane b*SEQ -> write column b
        out_ref[...] = jnp.concatenate(
            [out[:, b * SEQ:b * SEQ + 1] for b in range(B)], axis=1)

    return kernel


def cnn_1s_forward(x, params):
    cfg = CFG
    B, C_IN, SEQ = x.shape
    # glue: batch concatenated along lanes, bf16 operand for the MXU
    x_k = jnp.transpose(x, (1, 0, 2)).reshape(C_IN, B * SEQ).astype(jnp.bfloat16)

    vmem = pl.BlockSpec(memory_space=pltpu.MemorySpace.VMEM)
    out_pad = pl.pallas_call(
        make_kernel(cfg),
        out_shape=jax.ShapeDtypeStruct((F2P, B), jnp.float32),
        in_specs=[vmem, vmem],       # x + one param slab -> 2 input DMAs total
        out_specs=vmem,
    )(x_k, params['pslab'])

    return out_pad[:cfg['F2'], :].T                 # (B, F2)


def init_params(key, cfg):
    ks = jax.random.split(key, 8)

    def conv_init(k, out_c, in_c, ksz):
        # matches the module init: normal(0, sqrt(2 / (kernel_size * out_channels)))
        std = math.sqrt(2.0 / (ksz * out_c))
        return std * jax.random.normal(k, (out_c, in_c, ksz), jnp.float32)

    w1 = conv_init(ks[0], cfg['C1'], cfg['C_IN'], cfg['K1'])   # conv bias=False in this config
    w2 = conv_init(ks[1], cfg['C2'], cfg['C1'], cfg['K2'])
    w3 = conv_init(ks[2], cfg['C3'], cfg['C2'], cfg['K3'])

    def bn_fold(c):   # eval-mode BatchNorm with (default) running stats
        gamma, beta = jnp.ones((c,)), jnp.zeros((c,))
        mean, var = jnp.zeros((c,)), jnp.ones((c,))
        scale = gamma / jnp.sqrt(var + cfg['BN_EPS'])
        shift = beta - mean * scale
        return scale, shift

    bs1, bt1 = bn_fold(cfg['C1'])
    bs2, bt2 = bn_fold(cfg['C2'])

    def linear_init(kw, kb, out_f, in_f):
        bound = 1.0 / math.sqrt(in_f)
        w = jax.random.uniform(kw, (out_f, in_f), jnp.float32, -bound, bound)
        b = jax.random.uniform(kb, (out_f,), jnp.float32, -bound, bound)
        return w, b

    W1fc, b1fc = linear_init(ks[3], ks[4], cfg['F1'], FC1_IN)
    W2fc, b2fc = linear_init(ks[5], ks[6], cfg['F2'], cfg['F1'])

    # ---- kernel-side re-layout: one pre-padded f32 parameter slab (host glue) ----
    def stack_taps(w_eff):   # (C_out, C_in, K) -> (K*C_out, C_in), row k*C_out + o
        w_np = np.asarray(w_eff, np.float32)
        return np.transpose(w_np, (2, 0, 1)).reshape(-1, w_np.shape[1])

    # fused fc = fc2 @ fc1 (exact: no activation between fc1 and fc2), laid out for the
    # stride-S2 taps trick: row l*F2P + f holds Wf[f, c*L3 + l] over channels c.
    Wf = np.asarray(W2fc @ W1fc, np.float32).reshape(cfg['F2'], cfg['C3'], L3)   # [f, c, l]
    bf = np.asarray(W2fc @ b1fc + b2fc, np.float32)
    wfc = np.zeros((L3 * F2P, cfg['C3']), np.float32)
    for l in range(L3):
        wfc[l * F2P: l * F2P + cfg['F2'], :] = Wf[:, :, l]

    pslab = np.zeros((RTOT, CMAX), np.float32)

    def put_w(r0, w_np):
        pslab[r0:r0 + w_np.shape[0], 0:w_np.shape[1]] = w_np

    put_w(R0, stack_taps(w1 * bs1[:, None, None]))   # bn1 scale folded into conv1
    put_w(R1, stack_taps(w2 * bs2[:, None, None]))   # bn2 scale folded into conv2
    put_w(R2, stack_taps(w3))
    put_w(R3, wfc)
    pslab[RB1:RB1 + cfg['C1'], 0] = np.asarray(bt1)  # bn1 shift
    pslab[RB2:RB2 + cfg['C2'], 0] = np.asarray(bt2)  # bn2 shift
    pslab[RB3:RB3 + cfg['F2'], 0] = bf               # fused fc bias (kept f32)

    return dict(
        # original-layout params (for the pure-JAX reference)
        w1=w1, w2=w2, w3=w3, W1fc=W1fc, W2fc=W2fc, b1fc=b1fc, b2fc=b2fc,
        bn1_scale=bs1, bn1_shift=bt1, bn2_scale=bs2, bn2_shift=bt2,
        # kernel-layout params
        pslab=jnp.asarray(pslab),
    )


def ref_forward(x, p, cfg):
    """Pure-JAX f32 (highest-precision) reference of cnn_1s.forward (eval mode)."""
    dn = ('NCH', 'OIH', 'NCH')
    hp = lax.Precision.HIGHEST
    y = lax.conv_general_dilated(x, p['w1'], (1,), 'VALID', dimension_numbers=dn, precision=hp)
    y = y * p['bn1_scale'][None, :, None] + p['bn1_shift'][None, :, None]
    y = jnp.max(y.reshape(y.shape[0], y.shape[1], -1, cfg['P1']), axis=-1)
    y = jnp.maximum(y, 0.0)
    y = lax.conv_general_dilated(y, p['w2'], (1,), 'VALID', dimension_numbers=dn, precision=hp)
    y = y * p['bn2_scale'][None, :, None] + p['bn2_shift'][None, :, None]
    y = jnp.max(y.reshape(y.shape[0], y.shape[1], -1, cfg['P2']), axis=-1)
    y = jnp.maximum(y, 0.0)
    y = lax.conv_general_dilated(y, p['w3'], (1,), 'VALID', dimension_numbers=dn, precision=hp)
    y = jnp.maximum(y, 0.0)
    flat = y.reshape(y.shape[0], -1)                       # view(-1, C3*L3)
    h = jnp.dot(flat, p['W1fc'].T, precision=hp) + p['b1fc']
    return jnp.dot(h, p['W2fc'].T, precision=hp) + p['b2fc']


if __name__ == "__main__":
    _check_strided_layout(CFG)

    key = jax.random.PRNGKey(0)
    pkey, xkey = jax.random.split(key)
    params = init_params(pkey, CFG)
    x = jax.random.normal(xkey, (CFG['B'], CFG['C_IN'], CFG['SEQLEN']), jnp.float32)

    out = jax.block_until_ready(cnn_1s_forward(x, params))
    ref = ref_forward(x, params, CFG)

    assert out.shape == (CFG['B'], CFG['F2']), out.shape
    # Kernel uses bf16 operands with f32 MXU accumulation; compare against an exact-f32
    # reference with a bf16-class tolerance.
    assert jnp.allclose(out, ref, atol=1e-2, rtol=1e-2), (out, ref)
    print("KERNEL_OK")
</pallas_src>

<mosaic_0001>
module attributes {stable_mosaic.version = 11 : i64} {
  func.func @kernel(%arg0: memref<4x64xbf16, #tpu.memory_space<vmem>>, %arg1: memref<240x16xf32, #tpu.memory_space<vmem>>, %arg2: memref<16x2xf32, #tpu.memory_space<vmem>>) attributes {dimension_semantics = [], scalar_prefetch = 0 : i64, scratch_operands = 0 : i64, tpu.core_type = #tpu.core_type<tc>} {
    %c0 = arith.constant 0 : index
    %c0_0 = arith.constant 0 : index
    %0 = vector.load %arg1[%c0, %c0_0] : memref<240x16xf32, #tpu.memory_space<vmem>>, vector<24x4xf32>
    %1 = arith.truncf %0 : vector<24x4xf32> to vector<24x4xbf16>
    %c0_1 = arith.constant 0 : index
    %c0_2 = arith.constant 0 : index
    %2 = vector.load %arg0[%c0_1, %c0_2] : memref<4x64xbf16, #tpu.memory_space<vmem>>, vector<4x64xbf16>
    %cst = arith.constant dense<0.000000e+00> : vector<24x64xf32>
    %3 = tpu.matmul %1, %2, %cst {dimension_numbers = #tpu.dot_dimension_numbers<[1], [0], [0], [1], [0, 0, 1, 1], [], []>} : vector<24x4xbf16>, vector<4x64xbf16>, vector<24x64xf32> -> vector<24x64xf32>
    %4 = vector.extract_strided_slice %3 {offsets = [0, 0], sizes = [8, 62], strides = [1, 1]} : vector<24x64xf32> to vector<8x62xf32>
    %5 = vector.extract_strided_slice %3 {offsets = [8, 1], sizes = [8, 62], strides = [1, 1]} : vector<24x64xf32> to vector<8x62xf32>
    %6 = arith.addf %4, %5 : vector<8x62xf32>
    %7 = vector.extract_strided_slice %3 {offsets = [16, 2], sizes = [8, 62], strides = [1, 1]} : vector<24x64xf32> to vector<8x62xf32>
    %8 = arith.addf %6, %7 : vector<8x62xf32>
    %c200 = arith.constant 200 : index
    %c0_3 = arith.constant 0 : index
    %9 = vector.load %arg1[%c200, %c0_3] : memref<240x16xf32, #tpu.memory_space<vmem>>, vector<8x1xf32>
    %10 = vector.broadcast %9 : vector<8x1xf32> to vector<8x62xf32>
    %11 = arith.addf %8, %10 : vector<8x62xf32>
    %12 = vector.extract_strided_slice %11 {offsets = [0, 0], sizes = [8, 61], strides = [1, 1]} : vector<8x62xf32> to vector<8x61xf32>
    %13 = vector.extract_strided_slice %11 {offsets = [0, 1], sizes = [8, 61], strides = [1, 1]} : vector<8x62xf32> to vector<8x61xf32>
    %14 = arith.maximumf %12, %13 : vector<8x61xf32>
    %cst_4 = arith.constant 0.000000e+00 : f32
    %15 = vector.broadcast %cst_4 : f32 to vector<8x61xf32>
    %16 = arith.maximumf %14, %15 : vector<8x61xf32>
    %c24 = arith.constant 24 : index
    %c0_5 = arith.constant 0 : index
    %17 = vector.load %arg1[%c24, %c0_5] : memref<240x16xf32, #tpu.memory_space<vmem>>, vector<64x8xf32>
    %18 = arith.truncf %17 : vector<64x8xf32> to vector<64x8xbf16>
    %19 = arith.truncf %16 : vector<8x61xf32> to vector<8x61xbf16>
    %cst_6 = arith.constant dense<0.000000e+00> : vector<64x61xf32>
    %20 = tpu.matmul %18, %19, %cst_6 {dimension_numbers = #tpu.dot_dimension_numbers<[1], [0], [0], [1], [0, 0, 1, 1], [], []>} : vector<64x8xbf16>, vector<8x61xbf16>, vector<64x61xf32> -> vector<64x61xf32>
    %21 = vector.extract_strided_slice %20 {offsets = [0, 0], sizes = [16, 55], strides = [1, 1]} : vector<64x61xf32> to vector<16x55xf32>
    %22 = vector.extract_strided_slice %20 {offsets = [16, 2], sizes = [16, 55], strides = [1, 1]} : vector<64x61xf32> to vector<16x55xf32>
    %23 = arith.addf %21, %22 : vector<16x55xf32>
    %24 = vector.extract_strided_slice %20 {offsets = [32, 4], sizes = [16, 55], strides = [1, 1]} : vector<64x61xf32> to vector<16x55xf32>
    %25 = arith.addf %23, %24 : vector<16x55xf32>
    %26 = vector.extract_strided_slice %20 {offsets = [48, 6], sizes = [16, 55], strides = [1, 1]} : vector<64x61xf32> to vector<16x55xf32>
    %27 = arith.addf %25, %26 : vector<16x55xf32>
    %c208 = arith.constant 208 : index
    %c0_7 = arith.constant 0 : index
    %28 = vector.load %arg1[%c208, %c0_7] : memref<240x16xf32, #tpu.memory_space<vmem>>, vector<16x1xf32>
    %29 = vector.broadcast %28 : vector<16x1xf32> to vector<16x55xf32>
    %30 = arith.addf %27, %29 : vector<16x55xf32>
    %31 = vector.extract_strided_slice %30 {offsets = [0, 0], sizes = [16, 53], strides = [1, 1]} : vector<16x55xf32> to vector<16x53xf32>
    %32 = vector.extract_strided_slice %30 {offsets = [0, 2], sizes = [16, 53], strides = [1, 1]} : vector<16x55xf32> to vector<16x53xf32>
    %33 = arith.maximumf %31, %32 : vector<16x53xf32>
    %cst_8 = arith.constant 0.000000e+00 : f32
    %34 = vector.broadcast %cst_8 : f32 to vector<16x53xf32>
    %35 = arith.maximumf %33, %34 : vector<16x53xf32>
    %c88 = arith.constant 88 : index
    %c0_9 = arith.constant 0 : index
    %36 = vector.load %arg1[%c88, %c0_9] : memref<240x16xf32, #tpu.memory_space<vmem>>, vector<48x16xf32>
    %37 = arith.truncf %36 : vector<48x16xf32> to vector<48x16xbf16>
    %38 = arith.truncf %35 : vector<16x53xf32> to vector<16x53xbf16>
    %cst_10 = arith.constant dense<0.000000e+00> : vector<48x53xf32>
    %39 = tpu.matmul %37, %38, %cst_10 {dimension_numbers = #tpu.dot_dimension_numbers<[1], [0], [0], [1], [0, 0, 1, 1], [], []>} : vector<48x16xbf16>, vector<16x53xbf16>, vector<48x53xf32> -> vector<48x53xf32>
    %40 = vector.extract_strided_slice %39 {offsets = [0, 0], sizes = [16, 45], strides = [1, 1]} : vector<48x53xf32> to vector<16x45xf32>
    %41 = vector.extract_strided_slice %39 {offsets = [16, 4], sizes = [16, 45], strides = [1, 1]} : vector<48x53xf32> to vector<16x45xf32>
    %42 = arith.addf %40, %41 : vector<16x45xf32>
    %43 = vector.extract_strided_slice %39 {offsets = [32, 8], sizes = [16, 45], strides = [1, 1]} : vector<48x53xf32> to vector<16x45xf32>
    %44 = arith.addf %42, %43 : vector<16x45xf32>
    %cst_11 = arith.constant 0.000000e+00 : f32
    %45 = vector.broadcast %cst_11 : f32 to vector<16x45xf32>
    %46 = arith.maximumf %44, %45 : vector<16x45xf32>
    %c136 = arith.constant 136 : index
    %c0_12 = arith.constant 0 : index
    %47 = vector.load %arg1[%c136, %c0_12] : memref<240x16xf32, #tpu.memory_space<vmem>>, vector<64x16xf32>
    %48 = arith.truncf %47 : vector<64x16xf32> to vector<64x16xbf16>
    %49 = arith.truncf %46 : vector<16x45xf32> to vector<16x45xbf16>
    %cst_13 = arith.constant dense<0.000000e+00> : vector<64x45xf32>
    %50 = tpu.matmul %48, %49, %cst_13 {dimension_numbers = #tpu.dot_dimension_numbers<[1], [0], [0], [1], [0, 0, 1, 1], [], []>} : vector<64x16xbf16>, vector<16x45xbf16>, vector<64x45xf32> -> vector<64x45xf32>
    %51 = vector.extract_strided_slice %50 {offsets = [0, 0], sizes = [16, 33], strides = [1, 1]} : vector<64x45xf32> to vector<16x33xf32>
    %52 = vector.extract_strided_slice %50 {offsets = [16, 4], sizes = [16, 33], strides = [1, 1]} : vector<64x45xf32> to vector<16x33xf32>
    %53 = arith.addf %51, %52 : vector<16x33xf32>
    %54 = vector.extract_strided_slice %50 {offsets = [32, 8], sizes = [16, 33], strides = [1, 1]} : vector<64x45xf32> to vector<16x33xf32>
    %55 = arith.addf %53, %54 : vector<16x33xf32>
    %56 = vector.extract_strided_slice %50 {offsets = [48, 12], sizes = [16, 33], strides = [1, 1]} : vector<64x45xf32> to vector<16x33xf32>
    %57 = arith.addf %55, %56 : vector<16x33xf32>
    %c224 = arith.constant 224 : index
    %c0_14 = arith.constant 0 : index
    %58 = vector.load %arg1[%c224, %c0_14] : memref<240x16xf32, #tpu.memory_space<vmem>>, vector<16x1xf32>
    %59 = vector.broadcast %58 : vector<16x1xf32> to vector<16x33xf32>
    %60 = arith.addf %57, %59 : vector<16x33xf32>
    %61 = vector.extract_strided_slice %60 {offsets = [0, 0], sizes = [16, 1], strides = [1, 1]} : vector<16x33xf32> to vector<16x1xf32>
    %62 = vector.extract_strided_slice %60 {offsets = [0, 32], sizes = [16, 1], strides = [1, 1]} : vector<16x33xf32> to vector<16x1xf32>
    %63 = tpu.concatenate %61, %62 in 1 : vector<16x1xf32>, vector<16x1xf32> -> vector<16x2xf32>
    %c0_15 = arith.constant 0 : index
    %c0_16 = arith.constant 0 : index
    %64 = vector.load %arg2[%c0_15, %c0_16] : memref<16x2xf32, #tpu.memory_space<vmem>>, vector<16x2xf32>
    tpu.vector_store %arg2[%c0_15, %c0_16], %63 {strides = array<i32>} : memref<16x2xf32, #tpu.memory_space<vmem>>, vector<16x2xf32>,
    return
  }
}

</mosaic_0001>

<bundles_post_ra>
// kernel: tpu_custom_call.1
= control target key start
LH: loop header
LB: loop body
LE: loop exit
PB: predicated region body
PF: predicated region fallthrough
CT: control target
= control target key end

     0   :  { %vm25_vm0 = vcmask 1041408   ;;  %vm18_vm1 = vcmask 31744   ;;  %v591_v3 = vmov 0   ;;  %s592_s18 = smov 126   ;;  %s593_s19 = smov 127   ;;  %vm113_vm2 = vcmask 64512   ;;  %s743_s0 = inlined_call_operand.vmem [shape: bf16[4,64], index: 0, kind: input, shape index: {}]   ;;  %s744_s1 = inlined_call_operand.vmem [shape: f32[240,16], index: 1, kind: input, shape index: {}]   ;;  %s745_s2 = inlined_call_operand.vmem [shape: f32[16,2], index: 2, kind: output, shape index: {}]  }
   0x1   :  { %v17_v0 = vld [vmem:[%s743_s0] sm:$0x3]  ;;  %v13_v2 = vld [vmem:[%s744_s1 + $0x8] sm:$0xff]  ;;  %584 = vset.pattern.permute.xlu0 %v591_v3  ;;  %585 = vset.pattern.permute.xlu1 %v591_v3  ;;  %v14_v6 = vld [vmem:[%s744_s1 + $0x10] sm:$0xff]  ;;  %vm126_vm3 = vcmask 1043456   ;;  %s594_s12 = smov 124  }
   0x2   :  { %v12_v1 = vld [vmem:[%s744_s1] sm:$0xff]  ;;  %572 = vmatprep.subr.msk.bf16.mxu0 %vm25_vm0, %v17_v0  ;;  %v27_v4 = vsel %vm25_vm0, %v17_v0, 0  ;;  %v87_v7 = vld [vmem:[%s744_s1 + $0xc8] sm:$0xff]  ;;  %v16_v8 = vpack.c.bf16 %v14_v6, %v14_v6  ;;  %v225_v13 = vld [vmem:[%s744_s1 + $0xd0] sm:$0xff]  ;;  %s595_s13 = smov 122   ;;  %v596_v60 = vmov 0.0  }
   0x3   :  { %v15_v5 = vpack.c.bf16 %v13_v2, %v12_v1  ;;  %533 = vmatpush3.bf16.msra.mxu0 %v27_v4  ;;  %90 = vperm.xlu0 %584, %v87_v7   ;;  %v100_v16 = vld [vmem:[%s744_s1 + $0x18] sm:$0xff]  ;;  %v101_v17 = vld [vmem:[%s744_s1 + $0x20] sm:$0xff]  ;;  %v102_v27 = vld [vmem:[%s744_s1 + $0x28] sm:$0xff]  ;;  %vm597_vm4 = vmmov 0   ;;  %vm261_vm5 = vcmask 130048   ;;  %s598_s29 = smov 120  }
   0x4   :  { %v108_v19 = vpack.c.bf16 %v101_v17, %v100_v16  ;;  %v226_v23 = vld [vmem:[%s744_s1 + $0xd8] sm:$0xff]  ;;  %v103_v28 = vld [vmem:[%s744_s1 + $0x30] sm:$0xff]  ;;  %v105_v31 = vld [vmem:[%s744_s1 + $0x40] sm:$0xff]  ;;  %548 = vmatprep.subr.bf16.mxu0 %v596_v60  ;;  %vm492_vm6 = vcmask 7168   ;;  %vm495_vm7 = vcmask 15360  }
   0x5   :  { %534 = vmatprep.mubr.msk.bf16.mxu0 %vm18_vm1, %v15_v5  ;;  %v104_v30 = vld [vmem:[%s744_s1 + $0x38] sm:$0xff]  ;;  %v109_v33 = vpack.c.bf16 %v103_v28, %v102_v27  ;;  %v106_v35 = vld [vmem:[%s744_s1 + $0x48] sm:$0xff]  ;;  %v107_v36 = vld [vmem:[%s744_s1 + $0x50] sm:$0xff] }
   0x6   :  { %535 = vmatmul.mubr.msk.bf16.vlgmr.msra.gmra.mrb[0].mxu0 %vm18_vm1, %v16_v8  ;;  %540 = vmatprep.mubr.msk.bf16.mxu1 %vm113_vm2, %v108_v19  ;;  %v110_v34 = vpack.c.bf16 %v105_v31, %v104_v30  ;;  %v111_v37 = vpack.c.bf16 %v107_v36, %v106_v35  ;;  %v251_v7 = vld [vmem:[%s744_s1 + $0x58] sm:$0xff]  ;;  %v252_v8 = vld [vmem:[%s744_s1 + $0x60] sm:$0xff] }
   0x7   :  { %550 = vmatprep.mubr.msk.bf16.mxu0 %vm597_vm4, %v596_v60  ;;  %v470_v31 = vld [vmem:[%s744_s1 + $0xe0] sm:$0xff] }
  0x82   :  { %v91_v14 = vpop.permute.xlu0 %90 }
  0xd9   :  { %v536_v9 = vpop.f32.mrb[0].mxu0 }
  0xda   :  { %83 = vrot.lane.b32.xlu1 %v536_v9, %s592_s18  ;;  %v63_v10 = vpop.f32.mrb[1].mxu0 }
  0xdb   :  { %v537_v11 = vpop.f32.mrb[2].mxu0 }
  0xdc   :  { %v66_v12 = vpop.f32.mrb[3].mxu0  ;;  %v253_v11 = vld [vmem:[%s744_s1 + $0x68] sm:$0xff] }
  0xdd   :  { %78 = vrot.lane.b32.xlu0 %v66_v12, %s593_s19  ;;  %v254_v12 = vld [vmem:[%s744_s1 + $0x70] sm:$0xff] }
  0xe1   :  { %229 = vperm.xlu0 %584, %v225_v13   ;;  %v258_v13 = vpack.c.bf16 %v254_v12, %v253_v11 }
 0x14c   :  { %v84_v20 = vpop.permute.xlu1 %83 }
 0x14f   :  { %v79_v15 = vpop.permute.xlu0 %78 }
 0x150   :  { %v81_v18 = vadd.f32 %v79_v15, %v63_v10  ;;  %v257_v10 = vpack.c.bf16 %v252_v8, %v251_v7  ;;  %v256_v15 = vld [vmem:[%s744_s1 + $0x80] sm:$0xff] }
 0x152   :  { %v86_v21 = vadd.f32 %v84_v20, %v81_v18 }
 0x154   :  { %v93_v22 = vadd.f32 %v91_v14, %v86_v21  ;;  %v255_v14 = vld [vmem:[%s744_s1 + $0x78] sm:$0xff] }
 0x155   :  { %v259_v16 = vpack.c.bf16 %v256_v15, %v255_v14 }
 0x156   :  { %95 = vrot.lane.b32.xlu1 %v93_v22, %s593_s19 }
 0x15a   :  { %234 = vperm.xlu1 %585, %v226_v23  }
 0x160   :  { %v230_v46 = vpop.permute.xlu0 %229 }
 0x1c8   :  { %v96_v24 = vpop.permute.xlu1 %95 }
 0x1c9   :  { %v98_v25 = vmax.f32 %v93_v22, %v96_v24 }
 0x1cb   :  { %v99_v26 = vmax.f32 %v98_v25, 0.0  ;;  %v350_v25 = vld [vmem:[%s744_s1 + $0x88] sm:$0xff] }
 0x1cd   :  { %v112_v29 = vpack.c.bf16 %v99_v26, %v99_v26  ;;  %v351_v26 = vld [vmem:[%s744_s1 + $0x90] sm:$0xff] }
 0x1ce   :  { %v358_v27 = vpack.c.bf16 %v351_v26, %v350_v25 }
 0x1cf   :  { %573 = vmatprep.subr.msk.bf16.mxu1 %vm126_vm3, %v112_v29  ;;  %v128_v32 = vsel %vm126_vm3, %v112_v29, 0 }
 0x1d0   :  { %539 = vmatpush3.bf16.msra.mxu1 %v128_v32 }
 0x1d3   :  { %541 = vmatmul.mubr.msk.bf16.vlgmr.msra.gmra.mrb[0].mxu1 %vm113_vm2, %v109_v33  ;;  %v471_v33 = vld [vmem:[%s744_s1 + $0xe8] sm:$0xff] }
 0x1d4   :  { %544 = vmatprep.mubr.msk.bf16.mxu1 %vm113_vm2, %v110_v34 }
 0x1d9   :  { %v235_v47 = vpop.permute.xlu1 %234 }
 0x1db   :  { %545 = vmatmul.mubr.msk.bf16.gmra.mrb[4].mxu1 %vm113_vm2, %v111_v37 }
 0x1dc   :  { %564 = vmatprep.mubr.msk.bf16.mxu1 %vm261_vm5, %v358_v27 }
 0x2a6   :  { %v542_v38 = vpop.f32.mrb[0].mxu1 }
 0x2a7   :  { %197 = vrot.lane.b32.xlu0 %v542_v38, %s592_s18  ;;  %v164_v39 = vpop.f32.mrb[1].mxu1 }
 0x2a8   :  { %v543_v40 = vpop.f32.mrb[2].mxu1 }
 0x2a9   :  { %199 = vrot.lane.b32.xlu1 %v543_v40, %s592_s18  ;;  %v167_v41 = vpop.f32.mrb[3].mxu1 }
 0x2ae   :  { %v546_v42 = vpop.f32.mrb[4].mxu1 }
 0x2af   :  { %v180_v43 = vpop.f32.mrb[5].mxu1 }
 0x2b0   :  { %207 = vrot.lane.b32.xlu0 %v180_v43, %s594_s12  ;;  %v547_v44 = vpop.f32.mrb[6].mxu1 }
 0x2b1   :  { %v183_v45 = vpop.f32.mrb[7].mxu1 }
 0x2b2   :  { %209 = vrot.lane.b32.xlu1 %v183_v45, %s594_s12  ;;  %v353_v45 = vld [vmem:[%s744_s1 + $0xa0] sm:$0xff] }
 0x2b4   :  { %217 = vrot.lane.b32.xlu0 %v546_v42, %s595_s13 }
 0x2b6   :  { %219 = vrot.lane.b32.xlu1 %v547_v44, %s595_s13  ;;  %v352_v44 = vld [vmem:[%s744_s1 + $0x98] sm:$0xff] }
 0x319   :  { %v198_v48 = vpop.permute.xlu0 %197 }
 0x31a   :  { %v203_v51 = vadd.f32 %v198_v48, %v164_v39  ;;  %v355_v48 = vld [vmem:[%s744_s1 + $0xb0] sm:$0xff] }
 0x31b   :  { %v200_v49 = vpop.permute.xlu1 %199 }
 0x31c   :  { %v204_v53 = vadd.f32 %v200_v49, %v167_v41  ;;  %v359_v49 = vpack.c.bf16 %v353_v45, %v352_v44 }
 0x322   :  { %v208_v50 = vpop.permute.xlu0 %207 }
 0x323   :  { %v213_v54 = vadd.f32 %v208_v50, %v203_v51  ;;  %v356_v51 = vld [vmem:[%s744_s1 + $0xb8] sm:$0xff] }
 0x324   :  { %v210_v52 = vpop.permute.xlu1 %209 }
 0x325   :  { %v214_v56 = vadd.f32 %v210_v52, %v204_v53  ;;  %v357_v52 = vld [vmem:[%s744_s1 + $0xc0] sm:$0xff] }
 0x326   :  { %v218_v55 = vpop.permute.xlu0 %217  ;;  %v361_v53 = vpack.c.bf16 %v357_v52, %v356_v51 }
 0x327   :  { %v223_v57 = vadd.f32 %v218_v55, %v213_v54 }
 0x328   :  { %v220_v58 = vpop.permute.xlu1 %219 }
 0x329   :  { %v224_v59 = vadd.f32 %v220_v58, %v214_v56  ;;  %v237_v61 = vadd.f32 %v230_v46, %v223_v57 }
 0x32b   :  { %v238_v62 = vadd.f32 %v235_v47, %v224_v59  ;;  %v354_v47 = vld [vmem:[%s744_s1 + $0xa8] sm:$0xff]  ;;  %s599_s1 = smov 116  }
 0x32c   :  { %v360_v50 = vpack.c.bf16 %v355_v48, %v354_v47 }
 0x32d   :  { %v586_v63 = vpack.i.bf16 %v238_v62, %v237_v61 }
 0x32f   :  { %587 = vrot.lane.b32.xlu0 %v586_v63, %s592_s18 }
 0x3a1   :  { %v588_v0 = vpop.permute.xlu0 %587 }
 0x3a2   :  { %v590_v1 = vunpack.i.h.bf16 %v588_v0  ;;  %v589_v2 = vunpack.i.l.bf16 %v588_v0 }
 0x3a4   :  { %v248_v3 = vmax.f32 %v238_v62, %v590_v1  ;;  %v247_v4 = vmax.f32 %v237_v61, %v589_v2 }
 0x3a6   :  { %v250_v5 = vmax.f32 %v248_v3, 0.0  ;;  %v249_v6 = vmax.f32 %v247_v4, 0.0 }
 0x3a8   :  { %v260_v9 = vpack.c.bf16 %v250_v5, %v249_v6 }
 0x3aa   :  { %549 = vmatpush3.bf16.msra.mxu0 %v260_v9 }
 0x3ad   :  { %551 = vmatmul.mubr.msk.bf16.vlgmr.msra.gmra.mrb[4].mxu0 %vm261_vm5, %v257_v10 }
 0x3ae   :  { %554 = vmatprep.mubr.msk.bf16.mxu0 %vm597_vm4, %v596_v60 }
 0x3b5   :  { %555 = vmatmul.mubr.msk.bf16.gmra.mrb[8].mxu0 %vm261_vm5, %v258_v13 }
 0x3b6   :  { %558 = vmatprep.mubr.msk.bf16.mxu0 %vm597_vm4, %v596_v60 }
 0x3bd   :  { %559 = vmatmul.mubr.msk.bf16.gmra.mrb[12].mxu0 %vm261_vm5, %v259_v16 }
 0x480   :  { %v305_v17 = vpop.f32.mrb[4].mxu0 }
 0x481   :  { %v552_v18 = vpop.f32.mrb[5].mxu0 }
 0x482   :  { %v308_v19 = vpop.f32.mrb[6].mxu0 }
 0x483   :  { %v553_v20 = vpop.f32.mrb[7].mxu0 }
 0x488   :  { %v313_v21 = vpop.f32.mrb[8].mxu0 }
 0x489   :  { %330 = vrot.lane.b32.xlu1 %v313_v21, %s594_s12  ;;  %v556_v22 = vpop.f32.mrb[9].mxu0 }
 0x48a   :  { %v316_v23 = vpop.f32.mrb[10].mxu0 }
 0x48b   :  { %332 = vrot.lane.b32.xlu0 %v316_v23, %s594_s12  ;;  %v557_v24 = vpop.f32.mrb[11].mxu0 }
 0x490   :  { %v321_v28 = vpop.f32.mrb[12].mxu0 }
 0x491   :  { %340 = vrot.lane.b32.xlu1 %v321_v28, %s598_s29  ;;  %v560_v29 = vpop.f32.mrb[13].mxu0 }
 0x492   :  { %v324_v30 = vpop.f32.mrb[14].mxu0 }
 0x493   :  { %342 = vrot.lane.b32.xlu0 %v324_v30, %s598_s29  ;;  %v561_v32 = vpop.f32.mrb[15].mxu0 }
 0x495   :  { %474 = vperm.xlu1 %585, %v470_v31  }
 0x497   :  { %479 = vperm.xlu0 %584, %v471_v33  }
 0x4fb   :  { %v331_v34 = vpop.permute.xlu1 %330 }
 0x4fc   :  { %v336_v36 = vadd.f32 %v331_v34, %v305_v17 }
 0x4fd   :  { %v333_v35 = vpop.permute.xlu0 %332 }
 0x4fe   :  { %v337_v38 = vadd.f32 %v333_v35, %v308_v19 }
 0x503   :  { %v341_v37 = vpop.permute.xlu1 %340 }
 0x504   :  { %v346_v39 = vadd.f32 %v341_v37, %v336_v36 }
 0x505   :  { %v343_v40 = vpop.permute.xlu0 %342 }
 0x506   :  { %v347_v41 = vadd.f32 %v343_v40, %v337_v38  ;;  %v348_v42 = vmax.f32 %v346_v39, 0.0 }
 0x508   :  { %v349_v43 = vmax.f32 %v347_v41, 0.0 }
 0x50a   :  { %v362_v46 = vpack.c.bf16 %v349_v43, %v348_v42 }
 0x50c   :  { %562 = vmatprep.subr.bf16.mxu1 %v362_v46 }
 0x50d   :  { %563 = vmatpush3.bf16.msra.mxu1 %v362_v46 }
 0x510   :  { %565 = vmatmul.mubr.msk.bf16.vlgmr.msra.gmra.mrb[8].mxu1 %vm261_vm5, %v359_v49 }
 0x511   :  { %568 = vmatprep.mubr.msk.bf16.mxu1 %vm261_vm5, %v360_v50 }
 0x514   :  { %v475_v62 = vpop.permute.xlu1 %474 }
 0x516   :  { %v480_v63 = vpop.permute.xlu0 %479 }
 0x518   :  { %569 = vmatmul.mubr.msk.bf16.gmra.mrb[12].mxu1 %vm261_vm5, %v361_v53 }
 0x5e3   :  { %v566_v54 = vpop.f32.mrb[8].mxu1 }
 0x5e4   :  { %442 = vrot.lane.b32.xlu1 %v566_v54, %s594_s12  ;;  %v409_v55 = vpop.f32.mrb[9].mxu1 }
 0x5e5   :  { %v567_v56 = vpop.f32.mrb[10].mxu1 }
 0x5e6   :  { %444 = vrot.lane.b32.xlu0 %v567_v56, %s594_s12  ;;  %v412_v57 = vpop.f32.mrb[11].mxu1  ;;  %s600_s12 = smov 97  }
 0x5eb   :  { %v570_v58 = vpop.f32.mrb[12].mxu1 }
 0x5ec   :  { %v425_v59 = vpop.f32.mrb[13].mxu1 }
 0x5ed   :  { %452 = vrot.lane.b32.xlu1 %v425_v59, %s598_s29  ;;  %v571_v60 = vpop.f32.mrb[14].mxu1 }
 0x5ee   :  { %v428_v61 = vpop.f32.mrb[15].mxu1 }
 0x5ef   :  { %454 = vrot.lane.b32.xlu0 %v428_v61, %s598_s29 }
 0x5f1   :  { %462 = vrot.lane.b32.xlu1 %v570_v58, %s599_s1 }
 0x5f3   :  { %464 = vrot.lane.b32.xlu0 %v571_v60, %s599_s1 }
 0x656   :  { %v443_v0 = vpop.permute.xlu1 %442 }
 0x657   :  { %v448_v3 = vadd.f32 %v443_v0, %v409_v55 }
 0x658   :  { %v445_v1 = vpop.permute.xlu0 %444 }
 0x659   :  { %v449_v5 = vadd.f32 %v445_v1, %v412_v57 }
 0x65f   :  { %v453_v2 = vpop.permute.xlu1 %452 }
 0x660   :  { %v458_v6 = vadd.f32 %v453_v2, %v448_v3 }
 0x661   :  { %v455_v4 = vpop.permute.xlu0 %454 }
 0x662   :  { %v459_v8 = vadd.f32 %v455_v4, %v449_v5 }
 0x663   :  { %v463_v7 = vpop.permute.xlu1 %462 }
 0x664   :  { %v468_v9 = vadd.f32 %v463_v7, %v458_v6 }
 0x665   :  { %v465_v10 = vpop.permute.xlu0 %464 }
 0x666   :  { %v482_v11 = vadd.f32 %v475_v62, %v468_v9  ;;  %v469_v12 = vadd.f32 %v465_v10, %v459_v8 }
 0x668   :  { %v483_v13 = vadd.f32 %v480_v63, %v469_v12  ;;  %486 = vrot.lane.b32.xlu1 %v482_v11, %s600_s12 }
 0x66a   :  { %488 = vrot.lane.b32.xlu0 %v483_v13, %s600_s12 }
 0x6da   :  { %v487_v14 = vpop.permute.xlu1 %486 }
 0x6db   :  { %v493_v15 = vsel %vm492_vm6, %v482_v11, %v487_v14 }
 0x6dc   :  { %496 = vst.msk [vmem:[%s745_s2] sm:$0xff] %vm495_vm7, %v493_v15  ;;  %v489_v16 = vpop.permute.xlu0 %488 }
 0x6dd   :  { %v494_v17 = vsel %vm492_vm6, %v483_v13, %v489_v16 }
 0x6de   :  { %497 = vst.msk [vmem:[%s745_s2 + $0x8] sm:$0xff] %vm495_vm7, %v494_v17 }

</bundles_post_ra>
